<compile_context>
chip_gen: v7x
topology: tpu7x:2x2x1
jax: 0.10.0
libtpu: 0.0.40
codegen_flags: <defaults>
</compile_context>

<pallas_src>
import functools

import jax
import jax.numpy as jnp
from jax.experimental import pallas as pl
from jax.experimental.pallas import tpu as pltpu

LANES = 128


def _round_up(x, m):
    return ((x + m - 1) // m) * m


def dqn_boltzmann_kernel(x_ref, w1_ref, b1_ref, w2_ref, b2_ref, w3_ref, b3_ref,
                         o_ref):
    # fc1 + ReLU. bf16 MXU operands, f32 accumulate; ReLU fused with the bf16
    # downcast so the staged activation is bf16 (half the vld/vst bytes).
    h1 = jnp.dot(x_ref[...], w1_ref[...],
                 preferred_element_type=jnp.float32) + b1_ref[...]
    h1 = jnp.maximum(h1, 0.0).astype(jnp.bfloat16)

    # fc2 + ReLU (same fusion).
    h2 = jnp.dot(h1, w2_ref[...],
                 preferred_element_type=jnp.float32) + b2_ref[...]
    h2 = jnp.maximum(h2, 0.0).astype(jnp.bfloat16)

    # fc3 into a lane-dense (tb, 128) slab. Padded logit lanes carry a -inf
    # bias, so exp() maps them to exactly 0 and the softmax denominator is
    # exact with no extra masking. Softmax math stays f32 (v5e-safe VPU/EUP).
    logits = jnp.dot(h2, w3_ref[...],
                     preferred_element_type=jnp.float32) + b3_ref[...]

    m = jnp.max(logits, axis=-1, keepdims=True)
    e = jnp.exp(logits - m)
    s = jnp.sum(e, axis=-1, keepdims=True)
    # bf16 store: halves the dominant output writeback traffic.
    o_ref[...] = (e * pl.reciprocal(s, approx=True)).astype(o_ref.dtype)


def prepare_params(w1, b1, w2, b2, w3, b3):
    """One-time constant prep: lane-pad fc3 and cast weights to bf16.

    Hoisted out of the forward so the per-call path (especially the tiny
    RL act-selection batch) does not re-emit pad/cast XLA kernels over the
    weights on every invocation.
    """
    out_dim = w3.shape[1]
    out_pad = _round_up(out_dim, LANES)
    if out_pad != out_dim:
        # Zero weight columns + -inf bias columns => padded lanes softmax to 0.
        w3 = jnp.pad(w3, ((0, 0), (0, out_pad - out_dim)))
        b3 = jnp.pad(b3, ((0, 0), (0, out_pad - out_dim)),
                     constant_values=-jnp.inf)
    params = dict(
        w1=w1.astype(jnp.bfloat16), b1=b1.astype(jnp.float32),
        w2=w2.astype(jnp.bfloat16), b2=b2.astype(jnp.float32),
        w3=w3.astype(jnp.bfloat16), b3=b3.astype(jnp.float32),
    )
    return params, out_dim


def dqn_boltzmann_forward(x, params, out_dim, *, block_batch=1024,
                          core_parallel=False):
    w1, b1 = params["w1"], params["b1"]
    w2, b2 = params["w2"], params["b2"]
    w3, b3 = params["w3"], params["b3"]

    batch, in_dim = x.shape
    hidden = w1.shape[1]
    out_pad = w3.shape[1]

    # Cast x to bf16 first so the batch pad moves half the bytes.
    x_bf = x.astype(jnp.bfloat16)

    # Batch tiling: tb multiple of 8 (sublane tile), batch padded to tb.
    tb = min(block_batch, _round_up(batch, 8))
    padded_batch = _round_up(batch, tb)
    if padded_batch != batch:
        x_bf = jnp.pad(x_bf, ((0, padded_batch - batch), (0, 0)))
    grid = (padded_batch // tb,)

    flops = 2 * padded_batch * (in_dim * hidden + hidden * hidden
                                + hidden * out_pad)
    bytes_accessed = (x_bf.size * 2
                      + (w1.size + w2.size + w3.size) * 2
                      + (b1.size + b2.size + b3.size) * 4
                      + padded_batch * out_pad * 2)   # bf16 output slab

    resident = lambda i: (0, 0)   # weights/biases stay in VMEM across the grid

    # On v7x (2 TensorCores/chip) pass core_parallel=True so each core takes
    # half the batch tiles; only meaningful when there are >= 2 grid steps.
    if core_parallel and grid[0] >= 2:
        dim_sem = (pltpu.CORE_PARALLEL,)
    else:
        dim_sem = ("parallel",)

    out = pl.pallas_call(
        dqn_boltzmann_kernel,
        out_shape=jax.ShapeDtypeStruct((padded_batch, out_pad), jnp.bfloat16),
        grid=grid,
        in_specs=[
            pl.BlockSpec((tb, in_dim), lambda i: (i, 0)),   # x batch tile
            pl.BlockSpec((in_dim, hidden), resident),       # w1
            pl.BlockSpec((1, hidden), resident),            # b1
            pl.BlockSpec((hidden, hidden), resident),       # w2
            pl.BlockSpec((1, hidden), resident),            # b2
            pl.BlockSpec((hidden, out_pad), resident),      # w3 (lane-padded)
            pl.BlockSpec((1, out_pad), resident),           # b3 (-inf padded)
        ],
        out_specs=pl.BlockSpec((tb, out_pad), lambda i: (i, 0)),
        compiler_params=pltpu.CompilerParams(
            dimension_semantics=dim_sem,
            vmem_limit_bytes=32 * 1024 * 1024),
        cost_estimate=pl.CostEstimate(
            flops=flops,
            transcendentals=padded_batch * out_pad,
            bytes_accessed=bytes_accessed),
    )(x_bf, w1, b1, w2, b2, w3, b3)

    # Slice away batch padding and lane padding; return f32 probabilities to
    # match the PyTorch module's output dtype. Keep this inside the caller's
    # jit so XLA fuses the slice/cast with the consumer.
    return out[:batch, :out_dim].astype(jnp.float32)


def init_linear_params(key, in_features, out_features):
    # PyTorch nn.Linear default init: U(-1/sqrt(fan_in), 1/sqrt(fan_in)).
    bound = 1.0 / (in_features ** 0.5)
    kw, kb = jax.random.split(key)
    # Stored as [in, out] so the kernel computes x @ W + b.
    w = jax.random.uniform(kw, (in_features, out_features), jnp.float32,
                           minval=-bound, maxval=bound)
    b = jax.random.uniform(kb, (1, out_features), jnp.float32,
                           minval=-bound, maxval=bound)
    return w, b


if __name__ == "__main__":
    input_dim = 32
    hidden_dim = 128
    output_dim = 8
    batch = 2

    key = jax.random.PRNGKey(0)
    k_x, k1, k2, k3 = jax.random.split(key, 4)

    x = jax.random.normal(k_x, (batch, input_dim), jnp.float32)
    w1, b1 = init_linear_params(k1, input_dim, hidden_dim)
    w2, b2 = init_linear_params(k2, hidden_dim, hidden_dim)
    w3, b3 = init_linear_params(k3, hidden_dim, output_dim)

    # One-time constant prep (bf16 weights, lane-padded fc3), then a jitted
    # forward so the x cast/pad and the output slice/cast fuse around the
    # pallas_call instead of becoming separate HBM round trips.
    params, out_dim = prepare_params(w1, b1, w2, b2, w3, b3)
    fwd = jax.jit(functools.partial(dqn_boltzmann_forward, out_dim=out_dim))

    out = fwd(x, params)
    out = jax.block_until_ready(out)

    # Reference in plain JAX with the same bf16-operand / f32-accumulate math.
    def mm(a, w):
        return jnp.dot(a.astype(jnp.bfloat16), w.astype(jnp.bfloat16),
                       preferred_element_type=jnp.float32)

    h1 = jnp.maximum(mm(x, w1) + b1, 0.0)
    h2 = jnp.maximum(mm(h1, w2) + b2, 0.0)
    ref = jax.nn.softmax(mm(h2, w3) + b3, axis=1)

    assert out.shape == (batch, output_dim)
    assert not bool(jnp.any(jnp.isnan(out)))
    assert jnp.allclose(out, ref, atol=1e-2, rtol=1e-2)
    assert jnp.allclose(jnp.sum(out, axis=1), 1.0, atol=1e-2)

    print("KERNEL_OK")
</pallas_src>

<mosaic_0001>
module attributes {stable_mosaic.version = 11 : i64} {
  func.func @dqn_boltzmann_kernel(%arg0: i32, %arg1: memref<8x32xbf16, #tpu.memory_space<vmem>>, %arg2: memref<32x128xbf16, #tpu.memory_space<vmem>>, %arg3: memref<1x128xf32, #tpu.memory_space<vmem>>, %arg4: memref<128x128xbf16, #tpu.memory_space<vmem>>, %arg5: memref<1x128xf32, #tpu.memory_space<vmem>>, %arg6: memref<128x128xbf16, #tpu.memory_space<vmem>>, %arg7: memref<1x128xf32, #tpu.memory_space<vmem>>, %arg8: memref<8x128xbf16, #tpu.memory_space<vmem>>) attributes {dimension_semantics = [#tpu.dimension_semantics<parallel>], iteration_bounds = array<i64: 1>, scalar_prefetch = 0 : i64, scratch_operands = 0 : i64, tpu.core_type = #tpu.core_type<tc>, window_params = [{transform_indices = @transform_0, window_bounds = array<i64: 8, 32>}, {pipeline_mode = #tpu.pipeline_mode<synchronous>, transform_indices = @transform_1, window_bounds = array<i64: 32, 128>}, {pipeline_mode = #tpu.pipeline_mode<synchronous>, transform_indices = @transform_2, window_bounds = array<i64: 1, 128>}, {pipeline_mode = #tpu.pipeline_mode<synchronous>, transform_indices = @transform_3, window_bounds = array<i64: 128, 128>}, {pipeline_mode = #tpu.pipeline_mode<synchronous>, transform_indices = @transform_4, window_bounds = array<i64: 1, 128>}, {pipeline_mode = #tpu.pipeline_mode<synchronous>, transform_indices = @transform_5, window_bounds = array<i64: 128, 128>}, {pipeline_mode = #tpu.pipeline_mode<synchronous>, transform_indices = @transform_6, window_bounds = array<i64: 1, 128>}, {transform_indices = @transform_7, window_bounds = array<i64: 8, 128>}]} {
    %c0 = arith.constant 0 : index
    %c0_0 = arith.constant 0 : index
    %0 = vector.load %arg1[%c0, %c0_0] : memref<8x32xbf16, #tpu.memory_space<vmem>>, vector<8x32xbf16>
    %c0_1 = arith.constant 0 : index
    %c0_2 = arith.constant 0 : index
    %1 = vector.load %arg2[%c0_1, %c0_2] : memref<32x128xbf16, #tpu.memory_space<vmem>>, vector<32x128xbf16>
    %cst = arith.constant dense<0.000000e+00> : vector<8x128xf32>
    %2 = tpu.matmul %0, %1, %cst {dimension_numbers = #tpu.dot_dimension_numbers<[1], [0], [0], [1], [0, 0, 1, 1], [], []>} : vector<8x32xbf16>, vector<32x128xbf16>, vector<8x128xf32> -> vector<8x128xf32>
    %c0_3 = arith.constant 0 : index
    %c0_4 = arith.constant 0 : index
    %3 = vector.load %arg3[%c0_3, %c0_4] : memref<1x128xf32, #tpu.memory_space<vmem>>, vector<1x128xf32>
    %4 = vector.broadcast %3 : vector<1x128xf32> to vector<8x128xf32>
    %5 = arith.addf %2, %4 : vector<8x128xf32>
    %cst_5 = arith.constant 0.000000e+00 : f32
    %6 = vector.broadcast %cst_5 : f32 to vector<8x128xf32>
    %7 = arith.maximumf %5, %6 : vector<8x128xf32>
    %8 = arith.truncf %7 : vector<8x128xf32> to vector<8x128xbf16>
    %c0_6 = arith.constant 0 : index
    %c0_7 = arith.constant 0 : index
    %9 = vector.load %arg4[%c0_6, %c0_7] : memref<128x128xbf16, #tpu.memory_space<vmem>>, vector<128x128xbf16>
    %cst_8 = arith.constant dense<0.000000e+00> : vector<8x128xf32>
    %10 = tpu.matmul %8, %9, %cst_8 {dimension_numbers = #tpu.dot_dimension_numbers<[1], [0], [0], [1], [0, 0, 1, 1], [], []>} : vector<8x128xbf16>, vector<128x128xbf16>, vector<8x128xf32> -> vector<8x128xf32>
    %c0_9 = arith.constant 0 : index
    %c0_10 = arith.constant 0 : index
    %11 = vector.load %arg5[%c0_9, %c0_10] : memref<1x128xf32, #tpu.memory_space<vmem>>, vector<1x128xf32>
    %12 = vector.broadcast %11 : vector<1x128xf32> to vector<8x128xf32>
    %13 = arith.addf %10, %12 : vector<8x128xf32>
    %cst_11 = arith.constant 0.000000e+00 : f32
    %14 = vector.broadcast %cst_11 : f32 to vector<8x128xf32>
    %15 = arith.maximumf %13, %14 : vector<8x128xf32>
    %16 = arith.truncf %15 : vector<8x128xf32> to vector<8x128xbf16>
    %c0_12 = arith.constant 0 : index
    %c0_13 = arith.constant 0 : index
    %17 = vector.load %arg6[%c0_12, %c0_13] : memref<128x128xbf16, #tpu.memory_space<vmem>>, vector<128x128xbf16>
    %cst_14 = arith.constant dense<0.000000e+00> : vector<8x128xf32>
    %18 = tpu.matmul %16, %17, %cst_14 {dimension_numbers = #tpu.dot_dimension_numbers<[1], [0], [0], [1], [0, 0, 1, 1], [], []>} : vector<8x128xbf16>, vector<128x128xbf16>, vector<8x128xf32> -> vector<8x128xf32>
    %c0_15 = arith.constant 0 : index
    %c0_16 = arith.constant 0 : index
    %19 = vector.load %arg7[%c0_15, %c0_16] : memref<1x128xf32, #tpu.memory_space<vmem>>, vector<1x128xf32>
    %20 = vector.broadcast %19 : vector<1x128xf32> to vector<8x128xf32>
    %21 = arith.addf %18, %20 : vector<8x128xf32>
    %cst_17 = arith.constant dense<0xFF800000> : vector<8xf32>
    %22 = vector.multi_reduction <maximumf>, %21, %cst_17 [1] : vector<8x128xf32> to vector<8xf32>
    %23 = vector.shape_cast %22 : vector<8xf32> to vector<8x1xf32>
    %24 = vector.broadcast %23 : vector<8x1xf32> to vector<8x128xf32>
    %25 = arith.subf %21, %24 : vector<8x128xf32>
    %26 = math.exp %25 : vector<8x128xf32>
    %cst_18 = arith.constant dense<0.000000e+00> : vector<8xf32>
    %27 = vector.multi_reduction <add>, %26, %cst_18 [1] : vector<8x128xf32> to vector<8xf32>
    %28 = vector.shape_cast %27 : vector<8xf32> to vector<8x1xf32>
    %29 = tpu.reciprocal %28 {approx = true} : vector<8x1xf32> -> vector<8x1xf32>
    %30 = vector.broadcast %29 : vector<8x1xf32> to vector<8x128xf32>
    %31 = arith.mulf %26, %30 : vector<8x128xf32>
    %32 = arith.truncf %31 : vector<8x128xf32> to vector<8x128xbf16>
    %c0_19 = arith.constant 0 : index
    %c0_20 = arith.constant 0 : index
    %33 = vector.load %arg8[%c0_19, %c0_20] : memref<8x128xbf16, #tpu.memory_space<vmem>>, vector<8x128xbf16>
    tpu.vector_store %arg8[%c0_19, %c0_20], %32 {strides = array<i32>} : memref<8x128xbf16, #tpu.memory_space<vmem>>, vector<8x128xbf16>,
    return
  }
  func.func @transform_0(%arg0: i32) -> (i32, i32) {
    %c0_i32 = arith.constant 0 : i32
    %c0_i32_0 = arith.constant 0 : i32
    return %arg0, %c0_i32 : i32, i32
  }
  func.func @transform_1(%arg0: i32) -> (i32, i32) {
    %c0_i32 = arith.constant 0 : i32
    %c0_i32_0 = arith.constant 0 : i32
    %c0_i32_1 = arith.constant 0 : i32
    return %c0_i32, %c0_i32_0 : i32, i32
  }
  func.func @transform_2(%arg0: i32) -> (i32, i32) {
    %c0_i32 = arith.constant 0 : i32
    %c0_i32_0 = arith.constant 0 : i32
    %c0_i32_1 = arith.constant 0 : i32
    return %c0_i32, %c0_i32_0 : i32, i32
  }
  func.func @transform_3(%arg0: i32) -> (i32, i32) {
    %c0_i32 = arith.constant 0 : i32
    %c0_i32_0 = arith.constant 0 : i32
    %c0_i32_1 = arith.constant 0 : i32
    return %c0_i32, %c0_i32_0 : i32, i32
  }
  func.func @transform_4(%arg0: i32) -> (i32, i32) {
    %c0_i32 = arith.constant 0 : i32
    %c0_i32_0 = arith.constant 0 : i32
    %c0_i32_1 = arith.constant 0 : i32
    return %c0_i32, %c0_i32_0 : i32, i32
  }
  func.func @transform_5(%arg0: i32) -> (i32, i32) {
    %c0_i32 = arith.constant 0 : i32
    %c0_i32_0 = arith.constant 0 : i32
    %c0_i32_1 = arith.constant 0 : i32
    return %c0_i32, %c0_i32_0 : i32, i32
  }
  func.func @transform_6(%arg0: i32) -> (i32, i32) {
    %c0_i32 = arith.constant 0 : i32
    %c0_i32_0 = arith.constant 0 : i32
    %c0_i32_1 = arith.constant 0 : i32
    return %c0_i32, %c0_i32_0 : i32, i32
  }
  func.func @transform_7(%arg0: i32) -> (i32, i32) {
    %c0_i32 = arith.constant 0 : i32
    %c0_i32_0 = arith.constant 0 : i32
    return %arg0, %c0_i32 : i32, i32
  }
}

</mosaic_0001>

<bundles_post_ra>
// kernel: dqn_boltzmann_forward.1
= control target key start
LH: loop header
LB: loop body
LE: loop exit
PB: predicated region body
PF: predicated region fallthrough
CT: control target
= control target key end

     0   :  { %12 = vsyncpa [#allocation3], 0  ;;  %s648_s0 = inlined_call_operand.vmem [shape: bf16[8,32], index: 0, kind: input, shape index: {}]   ;;  %s649_s1 = inlined_call_operand.vmem [shape: bf16[32,128], index: 1, kind: input, shape index: {}]   ;;  %s650_s2 = inlined_call_operand.vmem [shape: f32[1,128], index: 2, kind: input, shape index: {}]   ;;  %s651_s3 = inlined_call_operand.hbm [shape: bf16[128,128], index: 3, kind: input, shape index: {}]   ;;  %s652_s4 = inlined_call_operand.vmem [shape: f32[1,128], index: 4, kind: input, shape index: {}]   ;;  %s653_s5 = inlined_call_operand.hbm [shape: bf16[128,128], index: 5, kind: input, shape index: {}]   ;;  %s654_s6 = inlined_call_operand.vmem [shape: f32[1,128], index: 6, kind: input, shape index: {}]   ;;  %s655_s7 = inlined_call_operand.vmem [shape: bf16[8,128], index: 7, kind: output, shape index: {}]  }
   0x1   :  { %13 = vsyncpa [#allocation5], 0  ;;  %s533_s24 = smov [#allocation2]   ;;  %s485_s28 = scalar_lea.hbm %s651_s3, 1024 }
   0x2   :  { %s25_s25 = sshll.u32 %s533_s24, 4  ;;  %p486_p0 = scmp.ne.s32.totalorder %s651_s3, %s485_s28  ;;  %s26_s25 = int_to_ptr.vmem [resolvable:$true] %s25_s25 }
   0x3   :  { %p489_p1 = scmp.lt.u32.totalorder %s485_s28, %s651_s3 }
   0x5   :  { %p491_p2 = pnand %p489_p1, %p486_p0 }
   0x7   :  { %494 = shalt.err (!%p491_p2)
}
   0x8   :  { %s495_s10 = scalar_lea.vmem %s26_s25, 1024  ;;  %p500_p4 = scmp.lt.s32.totalorder %s26_s25, %s26_s25 }
   0x9   :  { %p496_p3 = scmp.ne.s32.totalorder %s26_s25, %s495_s10  ;;  %p501_p5 = scmp.lt.s32.totalorder %s495_s10, %s495_s10 }
   0xb   :  { %p502_p6 = por %p501_p5, %p500_p4 }
   0xd   :  { %p503_p7 = pnand %p502_p6, %p496_p3 }
   0xf   :  { %506 = shalt.err (!%p503_p7)
}
  0x10   :  { %s534_s11 = smov 64   ;;  %s535_s12 = smov 4  }
  0x11   :  { %31 = dma.hbm_to_vmem [thread:$0]  %s651_s3, 1024, %s26_s25, [#allocation3], %s534_s11, %s534_s11, %s535_s12  }
  0x12   :  { %s536_s15 = smov [#allocation4]   ;;  %s507_s19 = scalar_lea.hbm %s653_s5, 1024 }
  0x13   :  { %s39_s16 = sshll.u32 %s536_s15, 4  ;;  %p508_p8 = scmp.ne.s32.totalorder %s653_s5, %s507_s19  ;;  %s40_s16 = int_to_ptr.vmem [resolvable:$true] %s39_s16 }
  0x14   :  { %p511_p9 = scmp.lt.u32.totalorder %s507_s19, %s653_s5 }
  0x16   :  { %p513_p10 = pnand %p511_p9, %p508_p8 }
  0x18   :  { %516 = shalt.err (!%p513_p10)
}
  0x19   :  { %s517_s24 = scalar_lea.vmem %s40_s16, 1024  ;;  %p522_p12 = scmp.lt.s32.totalorder %s40_s16, %s40_s16 }
  0x1a   :  { %p518_p11 = scmp.ne.s32.totalorder %s40_s16, %s517_s24  ;;  %p523_p13 = scmp.lt.s32.totalorder %s517_s24, %s517_s24 }
  0x1c   :  { %p524_p0 = por %p523_p13, %p522_p12 }
  0x1e   :  { %p525_p1 = pnand %p524_p0, %p518_p11 }
  0x20   :  { %528 = shalt.err (!%p525_p1)
}
  0x21   :  { %45 = dma.hbm_to_vmem [thread:$0]  %s653_s5, 1024, %s40_s16, [#allocation5], %s534_s11, %s534_s11, %s535_s12  }
  0x22   :  { %529 = dma.done.wait [#allocation3], 1024  }
  0x23   :  { %530 = vsyncadd [#allocation3], 4294966272 }
  0x24   :  { %531 = dma.done.wait [#allocation5], 1024  }
  0x25   :  { %532 = vsyncadd [#allocation5], 4294966272  ;;  %v537_v0 = vmov 0.0   ;;  %vm538_vm0 = vmmov 0   ;;  %v463_v1 = vld [vmem:[%s649_s1] sm:$0xff]   ;;  %v464_v2 = vld [vmem:[%s649_s1 + $0x8] sm:$0xff]  }
  0x26   :  { %409 = vmatprep.subr.bf16.mxu0 %v537_v0  ;;  %413 = vmatprep.mubr.msk.bf16.mxu0 %vm538_vm0, %v537_v0  ;;  %v465_v3 = vld [vmem:[#allocation2] sm:$0xff]   ;;  %vm79_vm1 = vcmask 261120   ;;  %v466_v4 = vld [vmem:[#allocation2 + $0x8] sm:$0xff]   ;;  %v55_v5 = vld [vmem:[%s648_s0] sm:$0xf] }
  0x27   :  { %417 = vmatprep.subr.bf16.mxu1 %v537_v0  ;;  %433 = vmatprep.mubr.msk.bf16.mxu1 %vm538_vm0, %v537_v0  ;;  %v467_v6 = vld [vmem:[#allocation2 + $0x10] sm:$0xff]   ;;  %v468_v7 = vld [vmem:[#allocation2 + $0x18] sm:$0xff]   ;;  %v469_v8 = vld [vmem:[#allocation2 + $0x20] sm:$0xff]  }
  0x28   :  { %410 = vmatpush3.bf16.msra.mxu0 %v463_v1  ;;  %418 = vmatpush3.bf16.msra.mxu1 %v465_v3  ;;  %v470_v9 = vld [vmem:[#allocation2 + $0x28] sm:$0xff]   ;;  %v471_v10 = vld [vmem:[#allocation2 + $0x30] sm:$0xff]   ;;  %v472_v11 = vld [vmem:[#allocation2 + $0x38] sm:$0xff]  }
  0x29   :  { %411 = vmatprep.subr.bf16.mxu0 %v537_v0  ;;  %419 = vmatprep.subr.bf16.mxu1 %v537_v0  ;;  %v473_v12 = vld [vmem:[#allocation4] sm:$0xff]   ;;  %v474_v13 = vld [vmem:[#allocation4 + $0x8] sm:$0xff]   ;;  %v475_v14 = vld [vmem:[#allocation4 + $0x10] sm:$0xff]  }
  0x2a   :  { %v476_v15 = vld [vmem:[#allocation4 + $0x18] sm:$0xff]   ;;  %v477_v16 = vld [vmem:[#allocation4 + $0x20] sm:$0xff]   ;;  %v478_v17 = vld [vmem:[#allocation4 + $0x28] sm:$0xff]  }
  0x2b   :  { %v366_v18 = vld [vmem:[%s650_s2] ss:$0 sm:$0xff]  ;;  %v480_v27 = vld [vmem:[#allocation4 + $0x38] sm:$0xff]  }
  0x2c   :  { %412 = vmatpush3.bf16.msra.mxu0 %v464_v2  ;;  %420 = vmatpush3.bf16.msra.mxu1 %v466_v4  ;;  %v479_v26 = vld [vmem:[#allocation4 + $0x30] sm:$0xff]  }
  0x2d   :  { %437 = vmatprep.subr.bf16.mxu0 %v537_v0  ;;  %421 = vmatprep.subr.bf16.mxu1 %v537_v0  ;;  %v370_v28 = vld [vmem:[%s652_s4] ss:$0 sm:$0xff] }
  0x2e   :  { %v379_v36 = vld [vmem:[%s654_s6] ss:$0 sm:$0xff] }
  0x2f   :  { %414 = vmatmul.mubr.msk.bf16.vlgmr.msra.gmra.mrb[0].mxu0 %vm79_vm1, %v55_v5 }
  0x30   :  { %453 = vmatprep.mubr.msk.bf16.mxu0 %vm538_vm0, %v537_v0  ;;  %422 = vmatpush3.bf16.msra.mxu1 %v467_v6 }
  0x31   :  { %423 = vmatprep.subr.bf16.mxu1 %v537_v0  ;;  %438 = vmatpush3.bf16.msra.mxu0 %v473_v12 }
  0x32   :  { %439 = vmatprep.subr.bf16.mxu0 %v537_v0 }
  0x34   :  { %424 = vmatpush3.bf16.msra.mxu1 %v468_v7 }
  0x35   :  { %425 = vmatprep.subr.bf16.mxu1 %v537_v0  ;;  %440 = vmatpush3.bf16.msra.mxu0 %v474_v13 }
  0x36   :  { %441 = vmatprep.subr.bf16.mxu0 %v537_v0 }
  0x38   :  { %426 = vmatpush3.bf16.msra.mxu1 %v469_v8 }
  0x39   :  { %427 = vmatprep.subr.bf16.mxu1 %v537_v0  ;;  %442 = vmatpush3.bf16.msra.mxu0 %v475_v14 }
  0x3a   :  { %443 = vmatprep.subr.bf16.mxu0 %v537_v0 }
  0x3c   :  { %428 = vmatpush3.bf16.msra.mxu1 %v470_v9 }
  0x3d   :  { %429 = vmatprep.subr.bf16.mxu1 %v537_v0  ;;  %444 = vmatpush3.bf16.msra.mxu0 %v476_v15 }
  0x3e   :  { %445 = vmatprep.subr.bf16.mxu0 %v537_v0 }
  0x40   :  { %430 = vmatpush3.bf16.msra.mxu1 %v471_v10 }
  0x41   :  { %431 = vmatprep.subr.bf16.mxu1 %v537_v0  ;;  %446 = vmatpush3.bf16.msra.mxu0 %v477_v16 }
  0x42   :  { %447 = vmatprep.subr.bf16.mxu0 %v537_v0 }
  0x44   :  { %432 = vmatpush3.bf16.msra.mxu1 %v472_v11 }
  0x45   :  { %448 = vmatpush3.bf16.msra.mxu0 %v478_v17 }
  0x46   :  { %449 = vmatprep.subr.bf16.mxu0 %v537_v0 }
  0x49   :  { %450 = vmatpush3.bf16.msra.mxu0 %v479_v26 }
  0x4a   :  { %451 = vmatprep.subr.bf16.mxu0 %v537_v0 }
  0x4d   :  { %452 = vmatpush3.bf16.msra.mxu0 %v480_v27 }
 0x102   :  { %v117_v19 = vpop.f32.mrb[0].mxu0 }
 0x103   :  { %v118_v20 = vadd.f32 %v366_v18, %v117_v19  ;;  %v415_v21 = vpop.f32.mrb[1].mxu0 }
 0x104   :  { %v120_v22 = vpop.f32.mrb[2].mxu0 }
 0x105   :  { %v123_v23 = vmax.f32 %v118_v20, 0.0  ;;  %v416_v24 = vpop.f32.mrb[3].mxu0 }
 0x107   :  { %v124_v25 = vpack.c.bf16 %v123_v23, %v123_v23 }
 0x109   :  { %434 = vmatmul.mubr.bf16.vlgmr.msra.gmra.mrb[0].mxu1 %v124_v25 }
 0x1dc   :  { %v230_v29 = vpop.f32.mrb[0].mxu1 }
 0x1dd   :  { %v231_v30 = vadd.f32 %v370_v28, %v230_v29  ;;  %v435_v31 = vpop.f32.mrb[1].mxu1 }
 0x1de   :  { %v233_v32 = vpop.f32.mrb[2].mxu1 }
 0x1df   :  { %v236_v33 = vmax.f32 %v231_v30, 0.0  ;;  %v436_v34 = vpop.f32.mrb[3].mxu1 }
 0x1e1   :  { %v237_v35 = vpack.c.bf16 %v236_v33, %v236_v33 }
 0x1e3   :  { %454 = vmatmul.mubr.bf16.vlgmr.msra.gmra.mrb[4].mxu0 %v237_v35 }
 0x2b6   :  { %v343_v37 = vpop.f32.mrb[4].mxu0 }
 0x2b7   :  { %v344_v38 = vadd.f32 %v379_v36, %v343_v37  ;;  %v455_v39 = vpop.f32.mrb[5].mxu0 }
 0x2b8   :  { %v346_v40 = vpop.f32.mrb[6].mxu0 }
 0x2b9   :  { %349 = vmax.xlane.f32.xlu0 %v344_v38  ;;  %v456_v41 = vpop.f32.mrb[7].mxu0 }
 0x346   :  { %v350_v42 = vpop.xlane.xlu0 %349 }
 0x347   :  { %v351_v43 = vsub.f32 %v344_v38, %v350_v42 }
 0x349   :  { %v352_v44 = vmul.f32 1.442695, %v351_v43 }
 0x34b   :  { %481 = vpow2.f32 %v352_v44 }
 0x355   :  { %v482_v45 = vpop.eup %481 }
 0x356   :  { %354 = vadd.xlane.f32.xlu0 %v482_v45 }
 0x3e3   :  { %v355_v46 = vpop.xlane.xlu0 %354 }
 0x3e4   :  { %483 = vrcp.f32 %v355_v46 }
 0x3ee   :  { %v484_v47 = vpop.eup %483 }
 0x3ef   :  { %v357_v48 = vmul.f32 %v484_v47, %v482_v45 }
 0x3f1   :  { %v358_v49 = vpack.c.bf16 %v357_v48, %v357_v48 }
 0x3f3   :  { %359 = vst [vmem:[%s655_s7] sm:$0xf] %v358_v49 }
 0x3f4   :  { %364 = vsyncpa [#allocation3], 1 }
 0x3f5   :  { %365 = vsyncpa [#allocation5], 1 }

</bundles_post_ra>
